<compile_context>
chip_gen: v7x
topology: tpu7x:2x2x1
jax: 0.10.0
libtpu: 0.0.40
codegen_flags: <defaults>
</compile_context>

<pallas_src>
import functools

import jax
import jax.numpy as jnp
from jax.experimental import pallas as pl
from jax.experimental.pallas import tpu as pltpu

_EPS = 1e-5  # nn.BatchNorm2d default eps


def _round_up(a, b):
    return (a + b - 1) // b * b


def _tpu_budgets():
    """Generation-aware VMEM budgets (v5e/v6e: 128 MiB, v7x: 64 MiB per TensorCore)."""
    try:
        cap = int(pltpu.get_tpu_info().vmem_capacity_bytes)
    except Exception:
        cap = 64 << 20  # assume the most restrictive generation (v7x)
    vmem_limit = min(cap * 3 // 4, 96 << 20)           # 48 MiB v7x, 96 MiB v5e/v6e
    resident_budget = min(vmem_limit // 2, 40 << 20)   # 24 MiB v7x, 40 MiB v5e/v6e
    tile_budget = min(vmem_limit // 2, 32 << 20)       # streamed-pass working-set target
    return vmem_limit, resident_budget, tile_budget


def _resident_bytes(m, tc):
    # ~2x input + 2x output (double-buffered) + ~2 f32 temporaries, all f32, padded layout.
    return 6 * _round_up(max(m, 1), 8) * _round_up(max(tc, 1), 128) * 4


def _pick_stats_channel_tile(c):
    """Lane tile for the streaming stats pass."""
    if c % 128 != 0:
        return c                      # full width: single tile, masked lane stores
    tc = min(512, c)
    if c >= 256:                      # >=2 channel tiles so both v7x TensorCores get work
        tc = min(tc, max(128, (c // 2) // 128 * 128))
    return tc


def _pick_resident_channel_tile(c, m, budget):
    """Largest lane tile whose whole-M slab fits `budget`; None -> use streaming path."""
    if c % 128 != 0:
        return c if _resident_bytes(m, c) <= budget else None
    cands = [t for t in (512, 384, 256, 128) if t <= c]
    if c >= 256:                      # prefer >=2 channel tiles (v7x dual TensorCore)
        two = [t for t in cands if pl.cdiv(c, t) >= 2]
        cands = two or cands
    for tc in cands:
        if _resident_bytes(m, tc) <= budget:
            return tc
    return None


def _pick_row_tile(m, width, budget, override):
    """Row tile for streamed passes. `override` is test-only (forces small tiles)."""
    if override is not None:
        return max(8, min(_round_up(override, 8), _round_up(m, 8)))
    per_row = _round_up(max(width, 1), 128) * 4 * 6   # ~6 f32 copies per element
    tm = max(8, (budget // per_row) // 8 * 8)
    return min(tm, _round_up(m, 8))


# ----------------------------- kernels ------------------------------------ #

def _bn_resident_kernel(x_ref, g_ref, b_ref, o_ref, *, inv_m):
    # x_ref: (M, tc) — all rows resident for one channel tile. Centered variance (in VMEM).
    x = x_ref[...].astype(jnp.float32)
    mean = jnp.sum(x, axis=0, keepdims=True) * inv_m
    xm = x - mean
    var = jnp.sum(xm * xm, axis=0, keepdims=True) * inv_m
    scale = g_ref[...] * jax.lax.rsqrt(var + _EPS)
    o_ref[...] = (xm * scale + b_ref[...]).astype(o_ref.dtype)


def _bn_stats_kernel(x_ref, g_ref, b_ref, scale_ref, shift_ref,
                     k_sc, sum_sc, sumsq_sc, *, inv_m, m_rows, tm, mask_rows):
    # grid = (n_channel_tiles, n_row_tiles); row (reduction) axis last.
    # Shifted sums (k = first row) avoid catastrophic cancellation in E[x^2]-E[x]^2.
    i = pl.program_id(1)

    @pl.when(i == 0)
    def _():
        k_sc[...] = x_ref[0:1, :].astype(jnp.float32)
        sum_sc[...] = jnp.zeros_like(sum_sc)
        sumsq_sc[...] = jnp.zeros_like(sumsq_sc)

    d = x_ref[...].astype(jnp.float32) - k_sc[...]
    if mask_rows:
        row = i * tm + jax.lax.broadcasted_iota(jnp.int32, (tm, 1), 0)
        d = jnp.where(row < m_rows, d, 0.0)
    sum_sc[...] += jnp.sum(d, axis=0, keepdims=True)
    sumsq_sc[...] += jnp.sum(d * d, axis=0, keepdims=True)

    @pl.when(i == pl.num_programs(1) - 1)
    def _():
        md = sum_sc[...] * inv_m
        var = jnp.maximum(sumsq_sc[...] * inv_m - md * md, 0.0)
        mean = md + k_sc[...]
        scale = g_ref[...] * jax.lax.rsqrt(var + _EPS)
        scale_ref[...] = scale
        shift_ref[...] = b_ref[...] - mean * scale


def _bn_apply_kernel(x_ref, scale_ref, shift_ref, o_ref):
    # One fused multiply-add per element, full-width (contiguous) blocks.
    o_ref[...] = (x_ref[...].astype(jnp.float32) * scale_ref[...]
                  + shift_ref[...]).astype(o_ref.dtype)


def _bias_kernel(x_ref, b_ref, o_ref):
    o_ref[...] = x_ref[...] + b_ref[...].astype(x_ref.dtype)


# ----------------------------- wrapper ------------------------------------ #

def batch_norm_block_epn(x, params, use_bn=True, *,
                         resident_vmem_bytes=None, row_tile=None):
    """x: (N_points, n_anchors, in_dim). Matches BatchNormBlockEPN.forward (training mode)."""
    N, A, C = x.shape
    M = N * A
    x2 = x.reshape(M, C)  # contiguous reshape — no HBM copy

    vmem_limit, resident_budget, tile_budget = _tpu_budgets()
    if resident_vmem_bytes is None:
        resident_vmem_bytes = resident_budget

    if use_bn:
        gamma = params["gamma"].reshape(1, C).astype(jnp.float32)
        beta = params["beta"].reshape(1, C).astype(jnp.float32)
        inv_m = 1.0 / float(M)

        tc_res = _pick_resident_channel_tile(C, M, resident_vmem_bytes)
        if tc_res is not None:
            # Single-read resident path: one HBM read + one write of x.
            out = pl.pallas_call(
                functools.partial(_bn_resident_kernel, inv_m=inv_m),
                out_shape=jax.ShapeDtypeStruct((M, C), x.dtype),
                grid=(pl.cdiv(C, tc_res),),
                in_specs=[pl.BlockSpec((M, tc_res), lambda j: (0, j)),
                          pl.BlockSpec((1, tc_res), lambda j: (0, j)),
                          pl.BlockSpec((1, tc_res), lambda j: (0, j))],
                out_specs=pl.BlockSpec((M, tc_res), lambda j: (0, j)),
                compiler_params=pltpu.CompilerParams(
                    dimension_semantics=("parallel",),
                    vmem_limit_bytes=vmem_limit),
            )(x2, gamma, beta)
        else:
            # Streaming pass 1: per-channel scale/shift via shifted sum / sumsq accumulation.
            tc = _pick_stats_channel_tile(C)
            tm = _pick_row_tile(M, tc, tile_budget, row_tile)
            scale, shift = pl.pallas_call(
                functools.partial(_bn_stats_kernel, inv_m=inv_m, m_rows=M,
                                  tm=tm, mask_rows=(M % tm != 0)),
                out_shape=(jax.ShapeDtypeStruct((1, C), jnp.float32),
                           jax.ShapeDtypeStruct((1, C), jnp.float32)),
                grid=(pl.cdiv(C, tc), pl.cdiv(M, tm)),      # reduction (row) axis last
                in_specs=[pl.BlockSpec((tm, tc), lambda j, i: (i, j)),
                          pl.BlockSpec((1, tc), lambda j, i: (0, j)),
                          pl.BlockSpec((1, tc), lambda j, i: (0, j))],
                out_specs=(pl.BlockSpec((1, tc), lambda j, i: (0, j)),
                           pl.BlockSpec((1, tc), lambda j, i: (0, j))),
                scratch_shapes=[pltpu.VMEM((1, tc), jnp.float32)] * 3,
                compiler_params=pltpu.CompilerParams(
                    dimension_semantics=("parallel", "arbitrary"),
                    vmem_limit_bytes=vmem_limit),
            )(x2, gamma, beta)

            # Streaming pass 2: fused y = x*scale + shift, full-width contiguous blocks.
            tm2 = _pick_row_tile(M, C, tile_budget, row_tile)
            out = pl.pallas_call(
                _bn_apply_kernel,
                out_shape=jax.ShapeDtypeStruct((M, C), x.dtype),
                grid=(pl.cdiv(M, tm2),),
                in_specs=[pl.BlockSpec((tm2, C), lambda i: (i, 0)),
                          pl.BlockSpec((1, C), lambda i: (0, 0)),
                          pl.BlockSpec((1, C), lambda i: (0, 0))],
                out_specs=pl.BlockSpec((tm2, C), lambda i: (i, 0)),
                compiler_params=pltpu.CompilerParams(
                    dimension_semantics=("parallel",),
                    vmem_limit_bytes=vmem_limit),
            )(x2, scale, shift)
    else:
        bias = params["bias"].reshape(1, C).astype(jnp.float32)
        tm2 = _pick_row_tile(M, C, tile_budget, row_tile)
        out = pl.pallas_call(
            _bias_kernel,
            out_shape=jax.ShapeDtypeStruct((M, C), x.dtype),
            grid=(pl.cdiv(M, tm2),),
            in_specs=[pl.BlockSpec((tm2, C), lambda i: (i, 0)),
                      pl.BlockSpec((1, C), lambda i: (0, 0))],
            out_specs=pl.BlockSpec((tm2, C), lambda i: (i, 0)),
            compiler_params=pltpu.CompilerParams(
                dimension_semantics=("parallel",),
                vmem_limit_bytes=vmem_limit),
        )(x2, bias)

    return out.reshape(N, A, C)


# ----------------------------- reference / test ---------------------------- #

def _reference(x, params, use_bn):
    if use_bn:
        xf = x.astype(jnp.float32)
        mean = jnp.mean(xf, axis=(0, 1), keepdims=True)
        var = jnp.mean((xf - mean) ** 2, axis=(0, 1), keepdims=True)
        y = (xf - mean) / jnp.sqrt(var + _EPS)
        return (y * params["gamma"] + params["beta"]).astype(x.dtype)
    return x + params["bias"]


def _check_case(key, n_points, n_anchors, in_dim, *, stream_row_tile):
    k0, k1, k2 = jax.random.split(key, 3)
    x = jax.random.normal(k0, (n_points, n_anchors, in_dim), dtype=jnp.float32)
    params = {
        "gamma": 1.0 + 0.1 * jax.random.normal(k1, (in_dim,), dtype=jnp.float32),
        "beta": 0.1 * jax.random.normal(k2, (in_dim,), dtype=jnp.float32),
        "bias": 0.1 * jax.random.normal(k1, (in_dim,), dtype=jnp.float32),
    }
    ref_bn = _reference(x, params, True)

    y_res = batch_norm_block_epn(x, params, use_bn=True)
    jax.block_until_ready(y_res)
    assert jnp.allclose(y_res, ref_bn, atol=1e-4, rtol=1e-4), "BN resident path mismatch"

    # Force the streaming (two-pass) path with multiple row steps (row_tile is test-only).
    y_str = batch_norm_block_epn(x, params, use_bn=True,
                                 resident_vmem_bytes=0, row_tile=stream_row_tile)
    jax.block_until_ready(y_str)
    assert jnp.allclose(y_str, ref_bn, atol=1e-4, rtol=1e-4), "BN streaming path mismatch"

    y_bias = batch_norm_block_epn(x, params, use_bn=False)
    jax.block_until_ready(y_bias)
    assert jnp.allclose(y_bias, _reference(x, params, False), atol=1e-6), "bias path mismatch"


if __name__ == "__main__":
    key = jax.random.PRNGKey(0)
    ks = jax.random.split(key, 3)

    # Case 1: C multiple of 128, M multiple of the row tile (no masking).
    _check_case(ks[0], 16, 4, 128, stream_row_tile=16)
    # Case 2: C not a multiple of 128, M not a multiple of the row tile (masked tail rows,
    #         full-width lane-masked blocks).
    _check_case(ks[1], 10, 3, 72, stream_row_tile=8)
    # Case 3: C = 256 -> two channel tiles (v7x dual-core sharding path), masked tail rows.
    _check_case(ks[2], 6, 5, 256, stream_row_tile=8)

    print("KERNEL_OK")
</pallas_src>

<mosaic_0001>
module attributes {stable_mosaic.version = 11 : i64} {
  func.func @_bn_resident_kernel(%arg0: i32, %arg1: memref<64x128xf32, #tpu.memory_space<vmem>>, %arg2: memref<1x128xf32, #tpu.memory_space<vmem>>, %arg3: memref<1x128xf32, #tpu.memory_space<vmem>>, %arg4: memref<64x128xf32, #tpu.memory_space<vmem>>) attributes {dimension_semantics = [#tpu.dimension_semantics<parallel>], iteration_bounds = array<i64: 1>, scalar_prefetch = 0 : i64, scratch_operands = 0 : i64, tpu.core_type = #tpu.core_type<tc>, window_params = [{transform_indices = @transform_0, window_bounds = array<i64: 64, 128>}, {transform_indices = @transform_1, window_bounds = array<i64: 1, 128>}, {transform_indices = @transform_2, window_bounds = array<i64: 1, 128>}, {transform_indices = @transform_3, window_bounds = array<i64: 64, 128>}]} {
    %c0 = arith.constant 0 : index
    %c0_0 = arith.constant 0 : index
    %0 = vector.load %arg1[%c0, %c0_0] : memref<64x128xf32, #tpu.memory_space<vmem>>, vector<64x128xf32>
    %cst = arith.constant dense<0.000000e+00> : vector<128xf32>
    %1 = vector.multi_reduction <add>, %0, %cst [0] : vector<64x128xf32> to vector<128xf32>
    %2 = vector.shape_cast %1 : vector<128xf32> to vector<1x128xf32>
    %cst_1 = arith.constant 1.562500e-02 : f32
    %3 = vector.broadcast %cst_1 : f32 to vector<1x128xf32>
    %4 = arith.mulf %2, %3 : vector<1x128xf32>
    %5 = vector.broadcast %4 : vector<1x128xf32> to vector<64x128xf32>
    %6 = arith.subf %0, %5 : vector<64x128xf32>
    %7 = arith.mulf %6, %6 : vector<64x128xf32>
    %cst_2 = arith.constant dense<0.000000e+00> : vector<128xf32>
    %8 = vector.multi_reduction <add>, %7, %cst_2 [0] : vector<64x128xf32> to vector<128xf32>
    %9 = vector.shape_cast %8 : vector<128xf32> to vector<1x128xf32>
    %cst_3 = arith.constant 1.562500e-02 : f32
    %10 = vector.broadcast %cst_3 : f32 to vector<1x128xf32>
    %11 = arith.mulf %9, %10 : vector<1x128xf32>
    %c0_4 = arith.constant 0 : index
    %c0_5 = arith.constant 0 : index
    %12 = vector.load %arg2[%c0_4, %c0_5] : memref<1x128xf32, #tpu.memory_space<vmem>>, vector<1x128xf32>
    %cst_6 = arith.constant 9.99999974E-6 : f32
    %13 = vector.broadcast %cst_6 : f32 to vector<1x128xf32>
    %14 = arith.addf %11, %13 : vector<1x128xf32>
    %15 = math.rsqrt %14 : vector<1x128xf32>
    %16 = arith.mulf %12, %15 : vector<1x128xf32>
    %17 = vector.broadcast %16 : vector<1x128xf32> to vector<64x128xf32>
    %18 = arith.mulf %6, %17 : vector<64x128xf32>
    %c0_7 = arith.constant 0 : index
    %c0_8 = arith.constant 0 : index
    %19 = vector.load %arg3[%c0_7, %c0_8] : memref<1x128xf32, #tpu.memory_space<vmem>>, vector<1x128xf32>
    %20 = vector.broadcast %19 : vector<1x128xf32> to vector<64x128xf32>
    %21 = arith.addf %18, %20 : vector<64x128xf32>
    %c0_9 = arith.constant 0 : index
    %c0_10 = arith.constant 0 : index
    %22 = vector.load %arg4[%c0_9, %c0_10] : memref<64x128xf32, #tpu.memory_space<vmem>>, vector<64x128xf32>
    tpu.vector_store %arg4[%c0_9, %c0_10], %21 {strides = array<i32>} : memref<64x128xf32, #tpu.memory_space<vmem>>, vector<64x128xf32>,
    return
  }
  func.func @transform_0(%arg0: i32) -> (i32, i32) {
    %c0_i32 = arith.constant 0 : i32
    %c0_i32_0 = arith.constant 0 : i32
    return %c0_i32, %arg0 : i32, i32
  }
  func.func @transform_1(%arg0: i32) -> (i32, i32) {
    %c0_i32 = arith.constant 0 : i32
    %c0_i32_0 = arith.constant 0 : i32
    return %c0_i32, %arg0 : i32, i32
  }
  func.func @transform_2(%arg0: i32) -> (i32, i32) {
    %c0_i32 = arith.constant 0 : i32
    %c0_i32_0 = arith.constant 0 : i32
    return %c0_i32, %arg0 : i32, i32
  }
  func.func @transform_3(%arg0: i32) -> (i32, i32) {
    %c0_i32 = arith.constant 0 : i32
    %c0_i32_0 = arith.constant 0 : i32
    return %c0_i32, %arg0 : i32, i32
  }
}

</mosaic_0001>

<bundles_post_ra>
// kernel: tpu_custom_call.1
= control target key start
LH: loop header
LB: loop body
LE: loop exit
PB: predicated region body
PF: predicated region fallthrough
CT: control target
= control target key end

     0   :  { %8 = vsyncpa [#allocation3], 0  ;;  %s254_s0 = inlined_call_operand.hbm [shape: f32[64,128], index: 0, kind: input, shape index: {}]   ;;  %s255_s1 = inlined_call_operand.vmem [shape: f32[1,128], index: 1, kind: input, shape index: {}]   ;;  %s256_s2 = inlined_call_operand.vmem [shape: f32[1,128], index: 2, kind: input, shape index: {}]   ;;  %s257_s3 = inlined_call_operand.hbm [shape: f32[64,128], index: 3, kind: output, shape index: {}]  }
   0x1   :  { %9 = vsyncpa [#allocation4], 0  ;;  %s194_s12 = smov [#allocation2]   ;;  %s146_s16 = scalar_lea.hbm %s254_s0, 1024 }
   0x2   :  { %s15_s13 = sshll.u32 %s194_s12, 4  ;;  %p147_p0 = scmp.ne.s32.totalorder %s254_s0, %s146_s16  ;;  %s16_s13 = int_to_ptr.vmem [resolvable:$true] %s15_s13 }
   0x3   :  { %p150_p1 = scmp.lt.u32.totalorder %s146_s16, %s254_s0 }
   0x5   :  { %p152_p2 = pnand %p150_p1, %p147_p0 }
   0x7   :  { %155 = shalt.err (!%p152_p2)
}
   0x8   :  { %s156_s21 = scalar_lea.vmem %s16_s13, 1024  ;;  %p161_p4 = scmp.lt.s32.totalorder %s16_s13, %s16_s13 }
   0x9   :  { %p157_p3 = scmp.ne.s32.totalorder %s16_s13, %s156_s21  ;;  %p162_p5 = scmp.lt.s32.totalorder %s156_s21, %s156_s21 }
   0xb   :  { %p163_p6 = por %p162_p5, %p161_p4 }
   0xd   :  { %p164_p7 = pnand %p163_p6, %p157_p3 }
   0xf   :  { %167 = shalt.err (!%p164_p7)
}
  0x10   :  { %s195_s22 = smov 128   ;;  %s196_s23 = smov 8  }
  0x11   :  { %21 = dma.hbm_to_vmem [thread:$0]  %s254_s0, 1024, %s16_s13, [#allocation3], %s195_s22, %s195_s22, %s196_s23  }
  0x12   :  { %190 = dma.done.wait [#allocation3], 1024  }
  0x13   :  { %191 = vsyncadd [#allocation3], 4294966272  ;;  %v29_v0 = vld [vmem:[#allocation2] sm:$0xff]  ;;  %v30_v1 = vld [vmem:[#allocation2 + $0x8] sm:$0xff]  ;;  %v86_v53 = vlaneseq  ;;  %s197_s29 = smov [#allocation5]  }
  0x14   :  { %v31_v2 = vld [vmem:[#allocation2 + $0x10] sm:$0xff]  ;;  %v37_v3 = vadd.f32 %v30_v1, %v29_v0  ;;  %v32_v4 = vld [vmem:[#allocation2 + $0x18] sm:$0xff]  ;;  %v33_v6 = vld [vmem:[#allocation2 + $0x20] sm:$0xff]  ;;  %s127_s30 = sshll.u32 %s197_s29, 4  ;;  %s128_s30 = int_to_ptr.vmem [resolvable:$true] %s127_s30 }
  0x15   :  { %v34_v8 = vld [vmem:[#allocation2 + $0x28] sm:$0xff]  ;;  %v35_v10 = vld [vmem:[#allocation2 + $0x30] sm:$0xff]  ;;  %v36_v12 = vld [vmem:[#allocation2 + $0x38] sm:$0xff]  ;;  %v87_v54 = vshrl.u32 %v86_v53, 7  ;;  %p173_p9 = scmp.lt.s32.totalorder %s128_s30, %s128_s30 }
  0x16   :  { %v38_v5 = vadd.f32 %v37_v3, %v31_v2  ;;  %v81_v55 = vld [vmem:[%s255_s1] sm:$0x1]  ;;  %s168_s1 = scalar_lea.vmem %s128_s30, 1024 }
  0x17   :  { %v88_v56 = vsub.s32 0, %v87_v54  ;;  %v139_v60 = vld [vmem:[%s256_s2] ss:$0 sm:$0xff]  ;;  %p169_p8 = scmp.ne.s32.totalorder %s128_s30, %s168_s1  ;;  %p174_p10 = scmp.lt.s32.totalorder %s168_s1, %s168_s1 }
  0x18   :  { %v39_v7 = vadd.f32 %v38_v5, %v32_v4 }
  0x19   :  { %p175_p11 = por %p174_p10, %p173_p9 }
  0x1a   :  { %v40_v9 = vadd.f32 %v39_v7, %v33_v6 }
  0x1b   :  { %p176_p12 = pnand %p175_p11, %p169_p8 }
  0x1c   :  { %v41_v11 = vadd.f32 %v40_v9, %v34_v8 }
  0x1e   :  { %v42_v13 = vadd.f32 %v41_v11, %v35_v10 }
  0x20   :  { %v43_v14 = vadd.f32 %v42_v13, %v36_v12 }
  0x22   :  { %v44_v15 = vrot.slane %v43_v14, 4 }
  0x24   :  { %v45_v16 = vadd.f32 %v44_v15, %v43_v14 }
  0x26   :  { %v46_v17 = vrot.slane %v45_v16, 2 }
  0x28   :  { %v47_v18 = vadd.f32 %v46_v17, %v45_v16 }
  0x2a   :  { %v48_v19 = vrot.slane %v47_v18, 1 }
  0x2c   :  { %v49_v20 = vadd.f32 %v48_v19, %v47_v18 }
  0x2e   :  { %v50_v21 = vmul.f32 0.015625, %v49_v20 }
  0x30   :  { %v51_v22 = vsub.f32 %v29_v0, %v50_v21  ;;  %v52_v23 = vsub.f32 %v30_v1, %v50_v21  ;;  %v53_v24 = vsub.f32 %v31_v2, %v50_v21  ;;  %v54_v25 = vsub.f32 %v32_v4, %v50_v21 }
  0x31   :  { %v55_v26 = vsub.f32 %v33_v6, %v50_v21  ;;  %v56_v30 = vsub.f32 %v34_v8, %v50_v21  ;;  %v57_v33 = vsub.f32 %v35_v10, %v50_v21  ;;  %v58_v36 = vsub.f32 %v36_v12, %v50_v21 }
  0x32   :  { %v59_v27 = vmul.f32 %v51_v22, %v51_v22  ;;  %v60_v28 = vmul.f32 %v52_v23, %v52_v23  ;;  %v61_v29 = vmul.f32 %v53_v24, %v53_v24  ;;  %v62_v31 = vmul.f32 %v54_v25, %v54_v25 }
  0x33   :  { %v63_v34 = vmul.f32 %v55_v26, %v55_v26  ;;  %v64_v37 = vmul.f32 %v56_v30, %v56_v30  ;;  %v65_v39 = vmul.f32 %v57_v33, %v57_v33  ;;  %v66_v41 = vmul.f32 %v58_v36, %v58_v36 }
  0x34   :  { %v67_v32 = vadd.f32 %v60_v28, %v59_v27 }
  0x36   :  { %v68_v35 = vadd.f32 %v67_v32, %v61_v29 }
  0x38   :  { %v69_v38 = vadd.f32 %v68_v35, %v62_v31 }
  0x3a   :  { %v70_v40 = vadd.f32 %v69_v38, %v63_v34 }
  0x3c   :  { %v71_v42 = vadd.f32 %v70_v40, %v64_v37 }
  0x3e   :  { %v72_v43 = vadd.f32 %v71_v42, %v65_v39 }
  0x40   :  { %v73_v44 = vadd.f32 %v72_v43, %v66_v41 }
  0x42   :  { %v74_v45 = vrot.slane %v73_v44, 4 }
  0x44   :  { %v75_v46 = vadd.f32 %v74_v45, %v73_v44 }
  0x46   :  { %v76_v47 = vrot.slane %v75_v46, 2 }
  0x48   :  { %v77_v48 = vadd.f32 %v76_v47, %v75_v46 }
  0x4a   :  { %v78_v49 = vrot.slane %v77_v48, 1 }
  0x4c   :  { %v79_v50 = vadd.f32 %v78_v49, %v77_v48 }
  0x4e   :  { %v80_v51 = vmul.f32 0.015625, %v79_v50 }
  0x50   :  { %v82_v52 = vadd.f32 1e-05, %v80_v51 }
  0x52   :  { %144 = vrsqrt.f32 %v82_v52 }
  0x5c   :  { %v145_v57 = vpop.eup %144 }
  0x5d   :  { %v84_v58 = vmul.f32 %v145_v57, %v81_v55 }
  0x5f   :  { %v89_v59 = vrot.slane %v84_v58, %v88_v56 }
  0x61   :  { %v91_v61 = vmul.f32 %v89_v59, %v51_v22  ;;  %v92_v62 = vmul.f32 %v89_v59, %v52_v23  ;;  %v93_v63 = vmul.f32 %v89_v59, %v53_v24  ;;  %v94_v0 = vmul.f32 %v89_v59, %v54_v25 }
  0x62   :  { %v95_v1 = vmul.f32 %v89_v59, %v55_v26  ;;  %v96_v2 = vmul.f32 %v89_v59, %v56_v30  ;;  %v97_v3 = vmul.f32 %v89_v59, %v57_v33  ;;  %v98_v4 = vmul.f32 %v89_v59, %v58_v36 }
  0x63   :  { %v106_v5 = vadd.f32 %v139_v60, %v91_v61  ;;  %v107_v6 = vadd.f32 %v139_v60, %v92_v62  ;;  %v108_v7 = vadd.f32 %v139_v60, %v93_v63  ;;  %v109_v8 = vadd.f32 %v139_v60, %v94_v0 }
  0x64   :  { %v110_v9 = vadd.f32 %v139_v60, %v95_v1  ;;  %v111_v10 = vadd.f32 %v139_v60, %v96_v2  ;;  %v112_v11 = vadd.f32 %v139_v60, %v97_v3  ;;  %v113_v12 = vadd.f32 %v139_v60, %v98_v4 }
  0x65   :  { %114 = vst [vmem:[#allocation5] sm:$0xff] %v106_v5  ;;  %115 = vst [vmem:[#allocation5 + $0x8] sm:$0xff] %v107_v6 }
  0x66   :  { %116 = vst [vmem:[#allocation5 + $0x10] sm:$0xff] %v108_v7  ;;  %117 = vst [vmem:[#allocation5 + $0x18] sm:$0xff] %v109_v8 }
  0x67   :  { %118 = vst [vmem:[#allocation5 + $0x20] sm:$0xff] %v110_v9  ;;  %119 = vst [vmem:[#allocation5 + $0x28] sm:$0xff] %v111_v10 }
  0x68   :  { %120 = vst [vmem:[#allocation5 + $0x30] sm:$0xff] %v112_v11  ;;  %121 = vst [vmem:[#allocation5 + $0x38] sm:$0xff] %v113_v12 }
  0x69   :  { %179 = shalt.err (!%p176_p12)
}
  0x6a   :  { %s180_s5 = scalar_lea.hbm %s257_s3, 1024 }
  0x6b   :  { %p181_p13 = scmp.ne.s32.totalorder %s257_s3, %s180_s5  ;;  %p184_p0 = scmp.lt.u32.totalorder %s180_s5, %s257_s3 }
  0x6d   :  { %p186_p1 = pnand %p184_p0, %p181_p13 }
  0x6f   :  { %189 = shalt.err (!%p186_p1)
}
  0x70   :  { %133 = dma.vmem_to_hbm [thread:$0]  %s128_s30, 1024, %s257_s3, [#allocation4], %s195_s22, %s195_s22, %s196_s23  }
  0x71   :  { %192 = dma.done.wait [#allocation4], 1024  }
  0x72   :  { %193 = vsyncadd [#allocation4], 4294966272 }
  0x73   :  { %137 = vsyncpa [#allocation3], 1 }
  0x74   :  { %138 = vsyncpa [#allocation4], 1 }

</bundles_post_ra>
